<compile_context>
chip_gen: v5e
topology: v5e:2x2
jax: 0.10.0
libtpu: 0.0.40
codegen_flags: <defaults>
</compile_context>

<pallas_src>
import functools

import jax
import jax.numpy as jnp
from jax import lax
from jax.experimental import pallas as pl
from jax.experimental.pallas import tpu as pltpu


def _normalize_kernel(x_ref, o_ref, *, power: float):
    """Lp-normalize each row of one (tile_batch, features) block."""
    x_src = x_ref[...]
    x = x_src.astype(jnp.float32)
    if power == 2.0:
        # VPU multiplies + lane reduce; one rsqrt per row rides the EUP slot.
        # (All-zero rows give NaN, matching the reference module's 0/0 — the
        # PyTorch module has no eps clamp.)
        # TODO(synk): on v7x, if the 128-lane XLU reduce ever becomes the
        # binding VLIW slot at 3.2 TB/s HBM, push this reduce onto the idle MXU
        # with a ones-vector dot; unnecessary at v5e/v6e bandwidth.
        ssq = jnp.sum(x * x, axis=1, keepdims=True)
        inv = lax.rsqrt(ssq)
        if jnp.dtype(o_ref.dtype).itemsize < 4:
            # bf16-style output: do the final scaling multiply in the narrow
            # dtype (bf16 VALU on v6e/v7x) — halves the store-side working set.
            o_ref[...] = x_src * inv.astype(o_ref.dtype)
        else:
            o_ref[...] = (x * inv).astype(o_ref.dtype)
    else:
        p = float(power)
        if p.is_integer():
            xp = lax.integer_pow(x, int(p))      # repeated multiplies on VPU
        else:
            xp = jnp.power(x, p)                 # generic fallback (EUP exp/log)
        norm = jnp.power(jnp.sum(xp, axis=1, keepdims=True), 1.0 / p)
        # Reciprocal rides the otherwise-idle EUP slot instead of a VPU divide.
        o_ref[...] = (x * pl.reciprocal(norm, approx=True)).astype(o_ref.dtype)


def _sublane_multiple(dtype) -> int:
    # f32 -> 8, bf16 -> 16, int8/fp8 -> 32 (sub-32-bit dtypes pack along sublanes).
    bits = jnp.dtype(dtype).itemsize * 8
    return max(8, 256 // bits)


def _tpu_generation():
    """Returns (multi_tensorcore, tile_budget_bytes, vmem_cap_bytes)."""
    try:
        kind = jax.devices()[0].device_kind.lower()
    except Exception:
        kind = ""
    mib = 1024 * 1024
    if "v7" in kind:
        # 2 TensorCores share the "parallel" grid axis; 64 MiB physical VMEM/TC.
        return True, 20 * mib, 48 * mib
    if "v5e" in kind or "v5 lite" in kind or "v6" in kind:
        # Single TC, 128 MiB VMEM: bigger single tiles amortize step overhead.
        return False, 40 * mib, 100 * mib
    # Unknown / other (cpu interpret, v4, v5p, ...): conservative defaults.
    return True, 20 * mib, 32 * mib


def _normalize_2d(x: jax.Array, power, vmem_tile_budget_bytes=None) -> jax.Array:
    b, d = x.shape
    itemsize = jnp.dtype(x.dtype).itemsize
    sub = _sublane_multiple(x.dtype)
    multi_tc, default_budget, vmem_cap = _tpu_generation()
    budget = vmem_tile_budget_bytes or default_budget

    # Per-row VMEM footprint: double-buffered input & output blocks in the
    # source dtype plus the f32 working copies inside the kernel body.
    bytes_per_row = d * (2 * itemsize + 2 * itemsize + 2 * 4)
    tb = max(sub, (budget // bytes_per_row) // sub * sub)
    if b <= sub:
        tb = b                              # full-extent block: always layout-legal
    else:
        tb = min(tb, (b // sub) * sub)      # never larger than the array dim

    # v7x: keep both TensorCores fed on the "parallel" batch axis — avoid a
    # single-tile grid and small odd step counts.  Single-TC chips (v5e/v6e)
    # take the whole batch in one tile when it fits the budget.
    if multi_tc and b > sub:
        n_steps = pl.cdiv(b, tb)
        if n_steps == 1:
            tb = max(sub, pl.cdiv(pl.cdiv(b, 2), sub) * sub)
        elif n_steps < 8 and n_steps % 2 == 1:
            tb = max(sub, pl.cdiv(pl.cdiv(b, n_steps + 1), sub) * sub)

    # Last block may be partial: padded-row results are garbage but their
    # stores are masked and no row feeds another, so valid rows are unaffected.
    n_steps = pl.cdiv(b, tb)

    # VMEM limit derived from the actual footprint (+ compiler scratch headroom),
    # clamped per generation so v7x's 64 MiB physical VMEM is never exceeded.
    vmem_limit = int(tb * bytes_per_row + 2 * 1024 * 1024)
    vmem_limit = max(16 * 1024 * 1024, min(vmem_limit, vmem_cap))

    kernel = functools.partial(_normalize_kernel, power=float(power))
    return pl.pallas_call(
        kernel,
        out_shape=jax.ShapeDtypeStruct((b, d), x.dtype),
        grid=(n_steps,),
        in_specs=[pl.BlockSpec((tb, d), lambda i: (i, 0))],
        out_specs=pl.BlockSpec((tb, d), lambda i: (i, 0)),
        compiler_params=pltpu.CompilerParams(
            dimension_semantics=("parallel",),
            vmem_limit_bytes=vmem_limit,
        ),
        cost_estimate=pl.CostEstimate(
            flops=3 * b * d,
            transcendentals=b,
            bytes_accessed=2 * b * d * itemsize,
        ),
    )(x)


def normalize(x: jax.Array, power: int = 2, *,
              vmem_tile_budget_bytes: int | None = None) -> jax.Array:
    """out = x / x.pow(power).sum(1, keepdim=True).pow(1/power)."""
    assert x.ndim >= 2, "expected at least 2 dims (reduction is over dim 1)"
    if x.ndim == 2:
        return _normalize_2d(x, power, vmem_tile_budget_bytes)
    # General rank: move the reduced dim (1) to the lane axis, flatten the rest
    # to rows (each row is independent), normalize, restore the layout.
    xm = jnp.moveaxis(x, 1, -1)
    shape = xm.shape
    out = _normalize_2d(xm.reshape(-1, shape[-1]), power, vmem_tile_budget_bytes)
    return jnp.moveaxis(out.reshape(shape), -1, 1)


if __name__ == "__main__":
    key = jax.random.PRNGKey(0)
    k0, k1, k2 = jax.random.split(key, 3)

    # Feature-embedding style input (batch, features) — the module's usual use.
    x = jax.random.normal(k0, (8, 128), dtype=jnp.float32)
    out = jax.block_until_ready(normalize(x, power=2))
    ref = x / jnp.power(jnp.sum(jnp.power(x, 2.0), axis=1, keepdims=True), 0.5)
    assert out.shape == x.shape and out.dtype == x.dtype
    assert jnp.allclose(out, ref, atol=1e-5, rtol=1e-4)

    # Batch not a multiple of the sublane tile (exercises the partial last block).
    x2 = jax.random.normal(k1, (13, 128), dtype=jnp.float32)
    out2 = jax.block_until_ready(normalize(x2, power=2))
    ref2 = x2 / jnp.power(jnp.sum(jnp.power(x2, 2.0), axis=1, keepdims=True), 0.5)
    assert jnp.allclose(out2, ref2, atol=1e-5, rtol=1e-4)

    # Conv-style 4D input (N, C, H, W): normalize over the channel dim.
    x3 = jax.random.normal(k2, (2, 4, 16, 16), dtype=jnp.float32)
    out3 = jax.block_until_ready(normalize(x3, power=2))
    ref3 = x3 / jnp.power(jnp.sum(jnp.power(x3, 2.0), axis=1, keepdims=True), 0.5)
    assert out3.shape == x3.shape
    assert jnp.allclose(out3, ref3, atol=1e-5, rtol=1e-4)

    print("KERNEL_OK")
</pallas_src>

<mosaic_0001>
module attributes {stable_mosaic.version = 11 : i64} {
  func.func @_normalize_kernel(%arg0: i32, %arg1: memref<8x128xf32, #tpu.memory_space<vmem>>, %arg2: memref<8x128xf32, #tpu.memory_space<vmem>>) attributes {dimension_semantics = [#tpu.dimension_semantics<parallel>], iteration_bounds = array<i64: 1>, scalar_prefetch = 0 : i64, scratch_operands = 0 : i64, tpu.core_type = #tpu.core_type<tc>, window_params = [{transform_indices = @transform_0, window_bounds = array<i64: 8, 128>}, {transform_indices = @transform_1, window_bounds = array<i64: 8, 128>}]} {
    %c0 = arith.constant 0 : index
    %c0_0 = arith.constant 0 : index
    %0 = vector.load %arg1[%c0, %c0_0] : memref<8x128xf32, #tpu.memory_space<vmem>>, vector<8x128xf32>
    %1 = arith.mulf %0, %0 : vector<8x128xf32>
    %cst = arith.constant dense<0.000000e+00> : vector<8xf32>
    %2 = vector.multi_reduction <add>, %1, %cst [1] : vector<8x128xf32> to vector<8xf32>
    %3 = vector.shape_cast %2 : vector<8xf32> to vector<8x1xf32>
    %4 = math.rsqrt %3 : vector<8x1xf32>
    %5 = vector.broadcast %4 : vector<8x1xf32> to vector<8x128xf32>
    %6 = arith.mulf %0, %5 : vector<8x128xf32>
    %c0_1 = arith.constant 0 : index
    %c0_2 = arith.constant 0 : index
    %7 = vector.load %arg2[%c0_1, %c0_2] : memref<8x128xf32, #tpu.memory_space<vmem>>, vector<8x128xf32>
    tpu.vector_store %arg2[%c0_1, %c0_2], %6 {strides = array<i32>} : memref<8x128xf32, #tpu.memory_space<vmem>>, vector<8x128xf32>,
    return
  }
  func.func @transform_0(%arg0: i32) -> (i32, i32) {
    %c0_i32 = arith.constant 0 : i32
    %c0_i32_0 = arith.constant 0 : i32
    return %arg0, %c0_i32 : i32, i32
  }
  func.func @transform_1(%arg0: i32) -> (i32, i32) {
    %c0_i32 = arith.constant 0 : i32
    %c0_i32_0 = arith.constant 0 : i32
    return %arg0, %c0_i32 : i32, i32
  }
}

</mosaic_0001>

<bundles_post_ra>
// kernel: tpu_custom_call.1
= control target key start
LH: loop header
LB: loop body
LE: loop exit
PB: predicated region body
PF: predicated region fallthrough
CT: control target
= control target key end

     0   :  { %6 = vsyncpa [#allocation3], 0  ;;  %s130_s0 = inlined_call_operand.hbm [shape: f32[8,128], index: 0, kind: input, shape index: {}]   ;;  %s131_s1 = inlined_call_operand.hbm [shape: f32[8,128], index: 1, kind: output, shape index: {}]  }
   0x1   :  { %7 = vsyncpa [#allocation4], 0  ;;  %s13_s8 = sshll.u32 %s130_s0, 4  ;;  %s112_s9 = smov [#allocation2]   ;;  %s14_s8 = int_to_ptr.hbm [resolvable:$true] %s13_s8 }
   0x2   :  { %s15_s10 = sshll.u32 %s112_s9, 4  ;;  %s16_s10 = int_to_ptr.vmem [resolvable:$true] %s15_s10 }
   0x3   :  { %18 = dma.hbm_to_vmem [thread:$0]  %s14_s8, 128, %s16_s10, [#allocation3]  }
   0x4   :  { %108 = dma.done.wait [#allocation3], 128  }
   0x5   :  { %109 = vsyncadd [#allocation3], 4294967168  ;;  %v23_v0 = vld [vmem:[#allocation2] sm:$0xff]  ;;  %s113_s0 = smov [#allocation5]   ;;  %s46_s14 = sshll.u32 %s131_s1, 4  ;;  %s47_s14 = int_to_ptr.hbm [resolvable:$true] %s46_s14 }
   0x6   :  { %v24_v1 = vmul.f32 %v23_v0, %v23_v0  ;;  %s44_s11 = sshll.u32 %s113_s0, 4  ;;  %s45_s11 = int_to_ptr.vmem [resolvable:$true] %s44_s11 }
   0x8   :  { %25 = vadd.xlane.f32.xlu0 %v24_v1 }
  0x7b   :  { %v26_v2 = vpop.xlane.xlu0 %25 }
  0x7c   :  { %58 = vrsqrt.f32 %v26_v2  ;;  %vm33_vm1 = vweird.f32 %v26_v2 }
  0x82   :  { %v59_v3 = vpop.eup %58 }
  0x83   :  { %v28_v4 = vmul.f32 %v59_v3, %v26_v2  ;;  %vm34_vm0 = vweird.f32 %v59_v3 }
  0x84   :  { %vm35_vm2 = vmor %vm33_vm1, %vm34_vm0 }
  0x85   :  { %v29_v5 = vmul.f32 %v59_v3, %v28_v4 }
  0x87   :  { %v30_v6 = vmul.f32 0.5, %v29_v5 }
  0x89   :  { %v31_v7 = vsub.f32 1.5, %v30_v6 }
  0x8b   :  { %v32_v8 = vmul.f32 %v59_v3, %v31_v7 }
  0x8d   :  { %v36_v9 = vsel %vm35_vm2, %v59_v3, %v32_v8 }
  0x8e   :  { %v37_v10 = vmul.f32 %v36_v9, %v23_v0 }
  0x90   :  { %38 = vst [vmem:[#allocation5] sm:$0xff] %v37_v10 }
  0x91   :  { %49 = dma.vmem_to_hbm [thread:$0]  %s45_s11, 128, %s47_s14, [#allocation4]  }
  0x92   :  { %110 = dma.done.wait [#allocation4], 128  }
  0x93   :  { %111 = vsyncadd [#allocation4], 4294967168 }
  0x94   :  { %54 = vsyncpa [#allocation3], 1 }
  0x95   :  { %55 = vsyncpa [#allocation4], 1 }

</bundles_post_ra>
